<compile_context>
chip_gen: v6e
topology: v6e:2x2x1
jax: 0.10.0
libtpu: 0.0.40
codegen_flags: <defaults>
</compile_context>

<pallas_src>
import functools

import jax
import jax.numpy as jnp
from jax import lax
from jax.experimental import pallas as pl
from jax.experimental.pallas import tpu as pltpu


def _round_up(x: int, m: int) -> int:
    return ((x + m - 1) // m) * m


def _chip_config():
    """Per-generation (gram-tile target, scoped-VMEM budget in bytes)."""
    kind = ""
    try:
        kind = jax.devices()[0].device_kind.lower()
    except Exception:
        pass
    if "v7" in kind or "7x" in kind:
        # 64 MiB physical VMEM per TensorCore; T=512 is already MXU-bound (3.2 TB/s HBM).
        t_target, vmem = 512, 44 * 1024 * 1024
    elif "v6" in kind:
        # 128 MiB physical; needs T >= ~768 to cross the ~650 flop/byte roofline knee.
        t_target, vmem = 1024, 96 * 1024 * 1024
    elif "v5" in kind:
        # 128 MiB physical; crossover ~240 flop/byte, T=512 gives headroom.
        t_target, vmem = 512, 64 * 1024 * 1024
    else:
        t_target, vmem = 512, 48 * 1024 * 1024
    try:
        cap = int(pltpu.get_tpu_info().vmem_capacity_bytes)
        vmem = min(vmem, int(cap * 0.7))
    except Exception:
        pass
    return t_target, vmem


# --------------------------------------------------------------------------------
# Pass 1: row-wise L2 normalization (once per row), bf16 cast for the MXU.
# --------------------------------------------------------------------------------
def normalize_kernel(f_ref, fn_ref):
    f = f_ref[...]                                      # (Tn, Dp) f32
    sumsq = jnp.sum(f * f, axis=1, keepdims=True)       # (Tn, 1)
    # 1 / max(||f||, 1e-12) == rsqrt(max(sumsq, 1e-24)); padded zero rows stay zero.
    inv = lax.rsqrt(jnp.maximum(sumsq, 1e-24))
    fn_ref[...] = (f * inv).astype(jnp.bfloat16)


# --------------------------------------------------------------------------------
# Pass 2: symmetric tiled Gram reduction with fused masking and deferred reductions.
# --------------------------------------------------------------------------------
def gram_kernel(i_tbl, j_tbl, w_tbl, lhs_ref, rhs_ref, lab_col_ref, lab_c_ref,
                sums_ref, cnt_ref, *, batch):
    c = pl.program_id(0)
    t = pl.program_id(1)
    spc = pl.num_programs(1)
    s = c * spc + t
    i = i_tbl[s]
    j = j_tbl[s]
    w = w_tbl[s]                      # 1: diagonal tile, 2: off-diagonal, 0: padding step
    tile = lhs_ref.shape[0]

    @pl.when(t == 0)
    def _init():
        sums_ref[...] = jnp.zeros_like(sums_ref)
        cnt_ref[...] = jnp.zeros_like(cnt_ref)

    # (T, T) Gram tile: contract last dims directly (no transposed RHS copy needed);
    # bf16 operands, f32 accumulation on the MXU.
    dot = lax.dot_general(lhs_ref[...], rhs_ref[...],
                          dimension_numbers=(((1,), (1,)), ((), ())),
                          preferred_element_type=jnp.float32)

    # Row labels: dynamic sublane slice of the resident (Bp, 1) label column.
    row_start = pl.multiple_of(i * tile, tile)
    lab_r = lab_col_ref[pl.ds(row_start, tile), :]      # (T, 1) int32
    lab_c = lab_c_ref[...]                              # (1, T) int32, lane-dense block
    same = lab_r == lab_c                               # (T, T) bool

    r_loc = lax.broadcasted_iota(jnp.int32, (tile, 1), 0)
    c_loc = lax.broadcasted_iota(jnp.int32, (1, tile), 1)

    # Only cheap sublane reductions here; the cross-lane reduce happens once in JAX.
    @pl.when(jnp.logical_and(i == j, w > 0))
    def _diag_tile():
        diag = r_loc == c_loc
        valid = jnp.logical_and(i * tile + r_loc < batch, j * tile + c_loc < batch)
        pos = jnp.logical_and(jnp.logical_and(same, valid), jnp.logical_not(diag))
        sums_ref[:, 0:1, :] += jnp.sum(jnp.where(pos, dot, 0.0), axis=0,
                                       keepdims=True).reshape(1, 1, tile)
        sums_ref[:, 1:2, :] += jnp.sum(dot, axis=0, keepdims=True).reshape(1, 1, tile)
        sums_ref[:, 2:3, :] += jnp.sum(jnp.where(diag, dot, 0.0), axis=0,
                                       keepdims=True).reshape(1, 1, tile)
        cnt_ref[:, 0:1, :] += jnp.sum(pos.astype(jnp.int32), axis=0,
                                      keepdims=True).reshape(1, 1, tile)

    @pl.when(i != j)
    def _off_tile():
        # Off-diagonal tiles have i < j <= nI-1, so their rows are always < batch;
        # only the column block can touch padding.  Contributions are doubled (symmetry).
        valid_c = (j * tile + c_loc) < batch
        pos = jnp.logical_and(same, valid_c)
        sums_ref[:, 0:1, :] += 2.0 * jnp.sum(jnp.where(pos, dot, 0.0), axis=0,
                                             keepdims=True).reshape(1, 1, tile)
        sums_ref[:, 1:2, :] += 2.0 * jnp.sum(dot, axis=0, keepdims=True).reshape(1, 1, tile)
        cnt_ref[:, 0:1, :] += 2 * jnp.sum(pos.astype(jnp.int32), axis=0,
                                          keepdims=True).reshape(1, 1, tile)
    # Padding steps (w == 0) fall into neither branch: the wasted dot is discarded.


# --------------------------------------------------------------------------------
# Wrapper
# --------------------------------------------------------------------------------
def supcon_loss(features, labels):
    """features: [B, D] float; labels: [B] int. Returns scalar float32 loss."""
    B, D = features.shape
    t_target, vmem_limit = _chip_config()
    Dp = _round_up(D, 128)

    # Gram tile: generation target, capped by the batch and by what fits the VMEM budget
    # (double-buffered bf16 LHS/RHS streams + (T, T) f32 temporaries).
    T = max(128, (min(t_target, _round_up(B, 128)) // 128) * 128)
    while T > 128:
        bufs = 2 * (2 * T * Dp * 2)
        tmps = 6 * T * T * 4
        if bufs + tmps <= int(0.7 * vmem_limit):
            break
        T -= 128
    # TODO(synk): for very large D (Dp >= ~8192) add a K grid axis with a (T, T) f32
    # accumulator instead of shrinking T.
    Bp = _round_up(B, T)
    nI = Bp // T

    f = jnp.pad(features.astype(jnp.float32), ((0, Bp - B), (0, Dp - D)))
    lab = jnp.pad(labels.astype(jnp.int32), (0, Bp - B))
    lab_row = lab.reshape(1, Bp)      # streamed as lane-dense (1, T) column-label blocks
    lab_col = lab.reshape(Bp, 1)      # resident; sliced along sublanes in-kernel

    # ---- Pass 1: normalize (memory-bound; modest row tile is enough).
    t_norm = 256
    while t_norm > 8 and (Bp % t_norm != 0 or 12 * t_norm * Dp > int(0.6 * vmem_limit)):
        t_norm //= 2
    fn = pl.pallas_call(
        normalize_kernel,
        out_shape=jax.ShapeDtypeStruct((Bp, Dp), jnp.bfloat16),
        grid=(Bp // t_norm,),
        in_specs=[pl.BlockSpec((t_norm, Dp), lambda i: (i, 0))],
        out_specs=pl.BlockSpec((t_norm, Dp), lambda i: (i, 0)),
        compiler_params=pltpu.CompilerParams(
            dimension_semantics=("parallel",),
            vmem_limit_bytes=vmem_limit),
    )(f)

    # ---- Pass 2: symmetric Gram reduction over the upper-triangular tile pairs.
    pairs = [(a, b) for a in range(nI) for b in range(a, nI)]
    NC = 2                                   # megacore split; harmless on 1-TC chips
    SPC = -(-len(pairs) // NC)
    pad = NC * SPC - len(pairs)
    i_tbl = jnp.asarray([p[0] for p in pairs] + [0] * pad, dtype=jnp.int32)
    j_tbl = jnp.asarray([p[1] for p in pairs] + [0] * pad, dtype=jnp.int32)
    w_tbl = jnp.asarray([1 if p[0] == p[1] else 2 for p in pairs] + [0] * pad,
                        dtype=jnp.int32)

    sums, cnts = pl.pallas_call(
        functools.partial(gram_kernel, batch=B),
        out_shape=(jax.ShapeDtypeStruct((NC, 8, T), jnp.float32),   # rows 0..2 used
                   jax.ShapeDtypeStruct((NC, 8, T), jnp.int32)),    # row 0 used
        grid_spec=pltpu.PrefetchScalarGridSpec(
            num_scalar_prefetch=3,
            grid=(NC, SPC),
            in_specs=[
                pl.BlockSpec((T, Dp), lambda c, t, it, jt, wt: (it[c * SPC + t], 0)),
                pl.BlockSpec((T, Dp), lambda c, t, it, jt, wt: (jt[c * SPC + t], 0)),
                pl.BlockSpec((Bp, 1), lambda c, t, it, jt, wt: (0, 0)),   # resident rows
                pl.BlockSpec((1, T), lambda c, t, it, jt, wt: (0, jt[c * SPC + t])),
            ],
            out_specs=(
                pl.BlockSpec((1, 8, T), lambda c, t, it, jt, wt: (c, 0, 0)),
                pl.BlockSpec((1, 8, T), lambda c, t, it, jt, wt: (c, 0, 0)),
            ),
        ),
        compiler_params=pltpu.CompilerParams(
            dimension_semantics=("parallel", "arbitrary"),
            vmem_limit_bytes=vmem_limit),
    )(i_tbl, j_tbl, w_tbl, fn, fn, lab_col, lab_row)

    # ---- Tiny JAX epilogue: final cross-lane reductions + loss formula.
    pos_sum = jnp.sum(sums[:, 0, :])
    tot_sum = jnp.sum(sums[:, 1, :])
    diag_sum = jnp.sum(sums[:, 2, :])
    n_pos = jnp.sum(cnts[:, 0, :]).astype(jnp.float32)    # exact while total < 2**31
    neg_sum = tot_sum - diag_sum - pos_sum
    n_neg = jnp.maximum(jnp.asarray(B * (B - 1), dtype=jnp.float32) - n_pos, 0.0)
    # All-labels-equal degenerate case: reference gets exactly 0 for the negative term.
    neg_sum = jnp.where(n_neg > 0.5, neg_sum, 0.0)
    pos_mean = pos_sum / (n_pos + 1e-6)
    neg_mean = neg_sum / (n_neg + 1e-6)
    return 1.0 - pos_mean + (1.0 + neg_mean)


# --------------------------------------------------------------------------------
# Pure-JAX reference mirroring the PyTorch forward (f32).
# --------------------------------------------------------------------------------
def supcon_loss_ref(features, labels):
    f = features.astype(jnp.float32)
    fn = f / jnp.maximum(jnp.linalg.norm(f, axis=1, keepdims=True), 1e-12)
    dot = fn @ fn.T
    lab = labels.reshape(-1, 1)
    mask = (lab == lab.T)
    eye = jnp.eye(mask.shape[0], dtype=bool)
    mask_pos = jnp.where(eye, 0.0, mask.astype(jnp.float32))
    mask_neg = (~mask).astype(jnp.float32)
    pos_mean = jnp.sum(mask_pos * dot) / (jnp.sum(mask_pos) + 1e-6)
    neg_mean = jnp.sum(mask_neg * dot) / (jnp.sum(mask_neg) + 1e-6)
    return 1.0 - pos_mean + (1.0 + neg_mean)


if __name__ == "__main__":
    key = jax.random.PRNGKey(0)
    kf, kl = jax.random.split(key)
    B, D = 8, 32
    features = jax.random.normal(kf, (B, D), dtype=jnp.float32)
    labels = jax.random.randint(kl, (B,), 0, 3, dtype=jnp.int32)

    loss = supcon_loss(features, labels)
    jax.block_until_ready(loss)

    ref = supcon_loss_ref(features, labels)
    # bf16 Gram operands -> loosened tolerance vs the f32 reference.
    assert jnp.allclose(loss, ref, atol=3e-2, rtol=0.0), (loss, ref)
    print("KERNEL_OK")
</pallas_src>

<mosaic_0001>
module attributes {stable_mosaic.version = 11 : i64} {
  func.func @normalize_kernel(%arg0: i32, %arg1: memref<128x128xf32, #tpu.memory_space<vmem>>, %arg2: memref<128x128xbf16, #tpu.memory_space<vmem>>) attributes {dimension_semantics = [#tpu.dimension_semantics<parallel>], iteration_bounds = array<i64: 1>, scalar_prefetch = 0 : i64, scratch_operands = 0 : i64, tpu.core_type = #tpu.core_type<tc>, window_params = [{transform_indices = @transform_0, window_bounds = array<i64: 128, 128>}, {transform_indices = @transform_1, window_bounds = array<i64: 128, 128>}]} {
    %c0 = arith.constant 0 : index
    %c0_0 = arith.constant 0 : index
    %0 = vector.load %arg1[%c0, %c0_0] : memref<128x128xf32, #tpu.memory_space<vmem>>, vector<128x128xf32>
    %1 = arith.mulf %0, %0 : vector<128x128xf32>
    %cst = arith.constant dense<0.000000e+00> : vector<128xf32>
    %2 = vector.multi_reduction <add>, %1, %cst [1] : vector<128x128xf32> to vector<128xf32>
    %3 = vector.shape_cast %2 : vector<128xf32> to vector<128x1xf32>
    %cst_1 = arith.constant 1.000000e-24 : f32
    %4 = vector.broadcast %cst_1 : f32 to vector<128x1xf32>
    %5 = arith.maximumf %3, %4 : vector<128x1xf32>
    %6 = math.rsqrt %5 : vector<128x1xf32>
    %7 = vector.broadcast %6 : vector<128x1xf32> to vector<128x128xf32>
    %8 = arith.mulf %0, %7 : vector<128x128xf32>
    %9 = arith.truncf %8 : vector<128x128xf32> to vector<128x128xbf16>
    %c0_2 = arith.constant 0 : index
    %c0_3 = arith.constant 0 : index
    %10 = vector.load %arg2[%c0_2, %c0_3] : memref<128x128xbf16, #tpu.memory_space<vmem>>, vector<128x128xbf16>
    tpu.vector_store %arg2[%c0_2, %c0_3], %9 {strides = array<i32>} : memref<128x128xbf16, #tpu.memory_space<vmem>>, vector<128x128xbf16>,
    return
  }
  func.func @transform_0(%arg0: i32) -> (i32, i32) {
    %c0_i32 = arith.constant 0 : i32
    %c0_i32_0 = arith.constant 0 : i32
    return %arg0, %c0_i32 : i32, i32
  }
  func.func @transform_1(%arg0: i32) -> (i32, i32) {
    %c0_i32 = arith.constant 0 : i32
    %c0_i32_0 = arith.constant 0 : i32
    return %arg0, %c0_i32 : i32, i32
  }
}

</mosaic_0001>

<bundles_post_ra>
// kernel: tpu_custom_call.1
= control target key start
LH: loop header
LB: loop body
LE: loop exit
PB: predicated region body
PF: predicated region fallthrough
CT: control target
= control target key end

     0   :  { %6 = vsyncpa [#allocation3], 0  ;;  %s495_s0 = inlined_call_operand.hbm [shape: f32[128,128], index: 0, kind: input, shape index: {}]   ;;  %s496_s1 = inlined_call_operand.hbm [shape: bf16[128,128], index: 1, kind: output, shape index: {}]  }
   0x1   :  { %7 = vsyncpa [#allocation4], 0  ;;  %s393_s6 = smov [#allocation2]  }
   0x2   :  { %s13_s7 = sshll.u32 %s393_s6, 4  ;;  %s14_s7 = int_to_ptr.vmem [resolvable:$true] %s13_s7 }
   0x3   :  { %s357_s8 = scalar_lea.vmem %s14_s7, 2048  ;;  %p362_p1 = scmp.lt.s32.totalorder %s14_s7, %s14_s7 }
   0x4   :  { %p358_p0 = scmp.ne.s32.totalorder %s14_s7, %s357_s8  ;;  %p363_p2 = scmp.lt.s32.totalorder %s357_s8, %s357_s8 }
   0x6   :  { %p364_p3 = por %p363_p2, %p362_p1 }
   0x8   :  { %p365_p4 = pnand %p364_p3, %p358_p0 }
   0xa   :  { %368 = shalt.err (!%p365_p4)
}
   0xb   :  { %s394_s9 = smov 128   ;;  %s395_s10 = smov 8  }
   0xc   :  { %19 = dma.hbm_to_vmem [thread:$0]  %s495_s0, 2048, %s14_s7, [#allocation3], %s394_s9, %s394_s9, %s395_s10  }
   0xd   :  { %389 = dma.done.wait [#allocation3], 2048  }
   0xe   :  { %390 = vsyncadd [#allocation3], 4294965248  ;;  %v412_v0 = vld [vmem:[#allocation2 + $0x10] sm:$0xff]  ;;  %v414_v1 = vld [vmem:[#allocation2] sm:$0xff]  ;;  %s396_s0 = smov [#allocation5]  }
   0xf   :  { %v416_v2 = vld [vmem:[#allocation2 + $0x18] sm:$0xff]  ;;  %v41_v3 = vmul.f32 %v412_v0, %v412_v0  ;;  %v39_v4 = vmul.f32 %v414_v1, %v414_v1  ;;  %v422_v5 = vld [vmem:[#allocation2 + $0x8] sm:$0xff]  ;;  %v430_v9 = vld [vmem:[#allocation2 + $0x20] sm:$0xff]  ;;  %s220_s13 = sshll.u32 %s396_s0, 4  ;;  %s221_s13 = int_to_ptr.vmem [resolvable:$true] %s220_s13 }
  0x10   :  { %v42_v6 = vmul.f32 %v416_v2, %v416_v2  ;;  %v40_v7 = vmul.f32 %v422_v5, %v422_v5  ;;  %v428_v8 = vld [vmem:[#allocation2 + $0x28] sm:$0xff]  ;;  %v43_v11 = vmul.f32 %v430_v9, %v430_v9  ;;  %v436_v12 = vld [vmem:[#allocation2 + $0x38] sm:$0xff]  ;;  %v438_v13 = vld [vmem:[#allocation2 + $0x30] sm:$0xff]  ;;  %s369_s14 = scalar_lea.vmem %s221_s13, 1024  ;;  %p374_p6 = scmp.lt.s32.totalorder %s221_s13, %s221_s13 }
  0x11   :  { %59 = vadd.xlane.f32.xlu1 %v41_v3  ;;  %55 = vadd.xlane.f32.xlu0 %v39_v4  ;;  %v44_v10 = vmul.f32 %v428_v8, %v428_v8  ;;  %v46_v14 = vmul.f32 %v436_v12, %v436_v12  ;;  %v45_v15 = vmul.f32 %v438_v13, %v438_v13  ;;  %v444_v16 = vld [vmem:[#allocation2 + $0x48] sm:$0xff]  ;;  %v446_v17 = vld [vmem:[#allocation2 + $0x40] sm:$0xff]  ;;  %v452_v20 = vld [vmem:[#allocation2 + $0x58] sm:$0xff]  ;;  %p370_p5 = scmp.ne.s32.totalorder %s221_s13, %s369_s14  ;;  %p375_p7 = scmp.lt.s32.totalorder %s369_s14, %s369_s14 }
  0x12   :  { %v48_v18 = vmul.f32 %v444_v16, %v444_v16  ;;  %v47_v19 = vmul.f32 %v446_v17, %v446_v17  ;;  %v454_v21 = vld [vmem:[#allocation2 + $0x50] sm:$0xff]  ;;  %v50_v22 = vmul.f32 %v452_v20, %v452_v20  ;;  %v460_v24 = vld [vmem:[#allocation2 + $0x68] sm:$0xff]  ;;  %v462_v25 = vld [vmem:[#allocation2 + $0x60] sm:$0xff] }
  0x13   :  { %v49_v23 = vmul.f32 %v454_v21, %v454_v21  ;;  %v52_v26 = vmul.f32 %v460_v24, %v460_v24  ;;  %v51_v27 = vmul.f32 %v462_v25, %v462_v25  ;;  %v468_v28 = vld [vmem:[#allocation2 + $0x78] sm:$0xff]  ;;  %v470_v29 = vld [vmem:[#allocation2 + $0x70] sm:$0xff]  ;;  %p376_p8 = por %p375_p7, %p374_p6 }
  0x14   :  { %v54_v30 = vmul.f32 %v468_v28, %v468_v28  ;;  %v53_v31 = vmul.f32 %v470_v29, %v470_v29 }
  0x15   :  { %61 = vadd.xlane.f32.xlu1 %v42_v6  ;;  %57 = vadd.xlane.f32.xlu0 %v40_v7  ;;  %p377_p9 = pnand %p376_p8, %p370_p5 }
  0x19   :  { %65 = vadd.xlane.f32.xlu1 %v44_v10  ;;  %63 = vadd.xlane.f32.xlu0 %v43_v11 }
  0x1d   :  { %69 = vadd.xlane.f32.xlu1 %v46_v14  ;;  %67 = vadd.xlane.f32.xlu0 %v45_v15 }
  0x21   :  { %73 = vadd.xlane.f32.xlu1 %v48_v18  ;;  %71 = vadd.xlane.f32.xlu0 %v47_v19 }
  0x25   :  { %77 = vadd.xlane.f32.xlu1 %v50_v22  ;;  %75 = vadd.xlane.f32.xlu0 %v49_v23 }
  0x29   :  { %81 = vadd.xlane.f32.xlu1 %v52_v26  ;;  %79 = vadd.xlane.f32.xlu0 %v51_v27 }
  0x2d   :  { %85 = vadd.xlane.f32.xlu1 %v54_v30  ;;  %83 = vadd.xlane.f32.xlu0 %v53_v31 }
  0x9a   :  { %v60_v32 = vpop.xlane.xlu1 %59  ;;  %v56_v33 = vpop.xlane.xlu0 %55 }
  0x9b   :  { %v89_v34 = vmax.f32 %v60_v32, 1e-24  ;;  %v87_v35 = vmax.f32 %v56_v33, 1e-24 }
  0x9d   :  { %317 = vrsqrt.f32 %v89_v34 }
  0x9e   :  { %v62_v36 = vpop.xlane.xlu1 %61  ;;  %v58_v37 = vpop.xlane.xlu0 %57  ;;  %319 = vrsqrt.f32 %v87_v35 }
  0x9f   :  { %v90_v38 = vmax.f32 %v62_v36, 1e-24  ;;  %v88_v39 = vmax.f32 %v58_v37, 1e-24 }
  0xa1   :  { %321 = vrsqrt.f32 %v90_v38 }
  0xa2   :  { %323 = vrsqrt.f32 %v88_v39  ;;  %v66_v40 = vpop.xlane.xlu1 %65  ;;  %v64_v41 = vpop.xlane.xlu0 %63 }
  0xa3   :  { %v92_v42 = vmax.f32 %v66_v40, 1e-24  ;;  %v91_v43 = vmax.f32 %v64_v41, 1e-24 }
  0xa5   :  { %325 = vrsqrt.f32 %v92_v42 }
  0xa6   :  { %327 = vrsqrt.f32 %v91_v43  ;;  %v70_v44 = vpop.xlane.xlu1 %69  ;;  %v68_v45 = vpop.xlane.xlu0 %67 }
  0xa7   :  { %v94_v46 = vmax.f32 %v70_v44, 1e-24  ;;  %v93_v47 = vmax.f32 %v68_v45, 1e-24 }
  0xa9   :  { %329 = vrsqrt.f32 %v94_v46 }
  0xaa   :  { %331 = vrsqrt.f32 %v93_v47  ;;  %v74_v48 = vpop.xlane.xlu1 %73  ;;  %v72_v49 = vpop.xlane.xlu0 %71 }
  0xab   :  { %v96_v50 = vmax.f32 %v74_v48, 1e-24  ;;  %v95_v51 = vmax.f32 %v72_v49, 1e-24  ;;  %v318_v52 = vpop.eup %317 }
  0xac   :  { %v320_v53 = vpop.eup %319  ;;  %v121_v58 = vmul.f32 %v318_v52, %v412_v0 }
  0xad   :  { %333 = vrsqrt.f32 %v96_v50  ;;  %v119_v62 = vmul.f32 %v320_v53, %v414_v1 }
  0xae   :  { %v322_v54 = vpop.eup %321  ;;  %335 = vrsqrt.f32 %v95_v51  ;;  %v78_v55 = vpop.xlane.xlu1 %77 }
  0xaf   :  { %v76_v56 = vpop.xlane.xlu0 %75  ;;  %v324_v57 = vpop.eup %323  ;;  %v122_v59 = vmul.f32 %v322_v54, %v416_v2  ;;  %v98_v60 = vmax.f32 %v78_v55, 1e-24 }
  0xb0   :  { %v97_v61 = vmax.f32 %v76_v56, 1e-24  ;;  %v120_v63 = vmul.f32 %v324_v57, %v422_v5 }
  0xb1   :  { %v272_v3 = vpack.c.bf16 %v122_v59, %v121_v58  ;;  %337 = vrsqrt.f32 %v98_v60 }
  0xb2   :  { %v326_v4 = vpop.eup %325  ;;  %v267_v6 = vpack.c.bf16 %v120_v63, %v119_v62  ;;  %339 = vrsqrt.f32 %v97_v61  ;;  %v82_v7 = vpop.xlane.xlu1 %81 }
  0xb3   :  { %v80_v10 = vpop.xlane.xlu0 %79  ;;  %v328_v11 = vpop.eup %327  ;;  %304 = vst [vmem:[#allocation5 + $0x8] sm:$0xff] %v272_v3   ;;  %v124_v14 = vmul.f32 %v326_v4, %v428_v8  ;;  %v100_v0 = vmax.f32 %v82_v7, 1e-24 }
  0xb4   :  { %v99_v15 = vmax.f32 %v80_v10, 1e-24  ;;  %268 = vst [vmem:[#allocation5] sm:$0xff] %v267_v6   ;;  %v123_v2 = vmul.f32 %v328_v11, %v430_v9 }
  0xb5   :  { %341 = vrsqrt.f32 %v100_v0 }
  0xb6   :  { %v330_v1 = vpop.eup %329  ;;  %v277_v18 = vpack.c.bf16 %v124_v14, %v123_v2  ;;  %343 = vrsqrt.f32 %v99_v15  ;;  %v86_v5 = vpop.xlane.xlu1 %85 }
  0xb7   :  { %v84_v19 = vpop.xlane.xlu0 %83  ;;  %v332_v22 = vpop.eup %331  ;;  %v126_v23 = vmul.f32 %v330_v1, %v436_v12  ;;  %v102_v26 = vmax.f32 %v86_v5, 1e-24 }
  0xb8   :  { %v101_v27 = vmax.f32 %v84_v19, 1e-24  ;;  %305 = vst [vmem:[#allocation5 + $0x10] sm:$0xff] %v277_v18   ;;  %v125_v30 = vmul.f32 %v332_v22, %v438_v13 }
  0xb9   :  { %345 = vrsqrt.f32 %v102_v26 }
  0xba   :  { %v334_v8 = vpop.eup %333  ;;  %v282_v31 = vpack.c.bf16 %v126_v23, %v125_v30  ;;  %347 = vrsqrt.f32 %v101_v27 }
  0xbb   :  { %v336_v32 = vpop.eup %335  ;;  %v128_v9 = vmul.f32 %v334_v8, %v444_v16 }
  0xbc   :  { %306 = vst [vmem:[#allocation5 + $0x18] sm:$0xff] %v282_v31   ;;  %v127_v33 = vmul.f32 %v336_v32, %v446_v17 }
  0xbe   :  { %v338_v34 = vpop.eup %337  ;;  %v287_v35 = vpack.c.bf16 %v128_v9, %v127_v33 }
  0xbf   :  { %v340_v36 = vpop.eup %339  ;;  %v130_v12 = vmul.f32 %v338_v34, %v452_v20 }
  0xc0   :  { %307 = vst [vmem:[#allocation5 + $0x20] sm:$0xff] %v287_v35   ;;  %v129_v37 = vmul.f32 %v340_v36, %v454_v21 }
  0xc2   :  { %v342_v38 = vpop.eup %341  ;;  %v292_v13 = vpack.c.bf16 %v130_v12, %v129_v37 }
  0xc3   :  { %v344_v39 = vpop.eup %343  ;;  %v132_v40 = vmul.f32 %v342_v38, %v460_v24 }
  0xc4   :  { %308 = vst [vmem:[#allocation5 + $0x28] sm:$0xff] %v292_v13   ;;  %v131_v41 = vmul.f32 %v344_v39, %v462_v25 }
  0xc6   :  { %v346_v16 = vpop.eup %345  ;;  %v297_v42 = vpack.c.bf16 %v132_v40, %v131_v41 }
  0xc7   :  { %v348_v17 = vpop.eup %347  ;;  %v134_v43 = vmul.f32 %v346_v16, %v468_v28 }
  0xc8   :  { %309 = vst [vmem:[#allocation5 + $0x30] sm:$0xff] %v297_v42   ;;  %v133_v20 = vmul.f32 %v348_v17, %v470_v29 }
  0xca   :  { %v302_v21 = vpack.c.bf16 %v134_v43, %v133_v20 }
  0xcc   :  { %310 = vst [vmem:[#allocation5 + $0x38] sm:$0xff] %v302_v21  }
  0xcd   :  { %380 = shalt.err (!%p377_p9)
}
  0xce   :  { %s397_s15 = smov 64   ;;  %s398_s16 = smov 4  }
  0xcf   :  { %226 = dma.vmem_to_hbm [thread:$0]  %s221_s13, 1024, %s496_s1, [#allocation4], %s397_s15, %s397_s15, %s398_s16  }
  0xd0   :  { %391 = dma.done.wait [#allocation4], 1024  }
  0xd1   :  { %392 = vsyncadd [#allocation4], 4294966272 }
  0xd2   :  { %230 = vsyncpa [#allocation3], 1 }
  0xd3   :  { %231 = vsyncpa [#allocation4], 1 }

</bundles_post_ra>
